<compile_context>
chip_gen: v7x
topology: tpu7x:2x2x1
jax: 0.10.0
libtpu: 0.0.40
codegen_flags: <defaults>
</compile_context>

<pallas_src>
import jax
import jax.numpy as jnp
from jax.experimental import pallas as pl
from jax.experimental.pallas import tpu as pltpu

_HALF_LOG_2PI = 0.9189385332046727  # 0.5 * log(2 * pi)

# Hoisted out of the traced path: one full-extent (1, 1) VMEM block, no grid.
_SPEC = pl.BlockSpec((1, 1), lambda: (0, 0), memory_space=pltpu.VMEM)


def _policy_g_kernel(actor_ref, log_std_ref, eps_ref,
                     std_ref, sample_ref, logp_ref):
    mu = actor_ref[...]
    log_std = log_std_ref[...]
    eps = eps_ref[...]

    std = jnp.exp(log_std)                    # single EUP exp
    sample = mu + std * eps                   # Normal(mu, std).rsample()
    z = (sample - mu) / std
    logp = -0.5 * z * z - log_std - _HALF_LOG_2PI   # Normal(mu, std).log_prob(sample)

    std_ref[...] = std
    sample_ref[...] = sample
    logp_ref[...] = logp


@jax.jit
def policy_g_forward(actor, log_std, eps):
    """Fused policy_g forward + distribution use.

    Returns (mu, std, sample, log_prob) where Normal(mu, std) is the
    distribution policy_g.forward() would return, sample = mu + std * eps,
    and log_prob = Normal(mu, std).log_prob(sample).

    actor, log_std, eps: f32 arrays of shape (1,).
    """
    actor2d = actor.reshape(1, 1).astype(jnp.float32)
    log_std2d = log_std.reshape(1, 1).astype(jnp.float32)
    eps2d = eps.reshape(1, 1).astype(jnp.float32)

    out = jax.ShapeDtypeStruct((1, 1), jnp.float32)
    std2d, sample2d, logp2d = pl.pallas_call(
        _policy_g_kernel,
        out_shape=(out, out, out),
        in_specs=[_SPEC, _SPEC, _SPEC],
        out_specs=(_SPEC, _SPEC, _SPEC),
    )(actor2d, log_std2d, eps2d)

    # mu is the actor parameter itself — no kernel copy / DMA round trip.
    mu = actor.astype(jnp.float32)
    # expand_as(mu) is a no-op here since mu.shape == std.shape == (1,).
    return mu, std2d.reshape(1), sample2d.reshape(1), logp2d.reshape(1)


if __name__ == "__main__":
    # Deterministic parameter init exactly as in __init__:
    #   actor   = ones(1) * 1.0
    #   log_std = ones(1) * 0.2
    actor = jnp.ones((1,), dtype=jnp.float32) * 1.0
    log_std = jnp.ones((1,), dtype=jnp.float32) * 0.2
    key = jax.random.PRNGKey(0)
    eps = jax.random.normal(key, (1,), dtype=jnp.float32)

    mu, std, sample, logp = policy_g_forward(actor, log_std, eps)
    jax.block_until_ready((mu, std, sample, logp))

    # Reference semantics (what Normal(mu, std) would give).
    expected_std = jnp.exp(log_std)
    expected_sample = actor + expected_std * eps
    expected_logp = (-0.5 * ((expected_sample - actor) / expected_std) ** 2
                     - log_std - 0.5 * jnp.log(2.0 * jnp.pi))

    assert mu.shape == (1,) and std.shape == (1,)
    assert sample.shape == (1,) and logp.shape == (1,)
    assert jnp.allclose(mu, actor, rtol=1e-6, atol=1e-6)
    assert jnp.allclose(std, expected_std, rtol=1e-6, atol=1e-6)
    assert jnp.allclose(sample, expected_sample, rtol=1e-6, atol=1e-6)
    assert jnp.allclose(logp, expected_logp, rtol=1e-5, atol=1e-6)

    print("KERNEL_OK")
</pallas_src>

<mosaic_0001>
module attributes {stable_mosaic.version = 11 : i64} {
  func.func @_policy_g_kernel(%arg0: memref<1x1xf32, #tpu.memory_space<vmem>>, %arg1: memref<1x1xf32, #tpu.memory_space<vmem>>, %arg2: memref<1x1xf32, #tpu.memory_space<vmem>>, %arg3: memref<1x1xf32, #tpu.memory_space<vmem>>, %arg4: memref<1x1xf32, #tpu.memory_space<vmem>>, %arg5: memref<1x1xf32, #tpu.memory_space<vmem>>) attributes {dimension_semantics = [], scalar_prefetch = 0 : i64, scratch_operands = 0 : i64, tpu.core_type = #tpu.core_type<tc>} {
    %c0 = arith.constant 0 : index
    %c0_0 = arith.constant 0 : index
    %0 = vector.load %arg0[%c0, %c0_0] : memref<1x1xf32, #tpu.memory_space<vmem>>, vector<1x1xf32>
    %c0_1 = arith.constant 0 : index
    %c0_2 = arith.constant 0 : index
    %1 = vector.load %arg1[%c0_1, %c0_2] : memref<1x1xf32, #tpu.memory_space<vmem>>, vector<1x1xf32>
    %c0_3 = arith.constant 0 : index
    %c0_4 = arith.constant 0 : index
    %2 = vector.load %arg2[%c0_3, %c0_4] : memref<1x1xf32, #tpu.memory_space<vmem>>, vector<1x1xf32>
    %3 = math.exp %1 : vector<1x1xf32>
    %4 = arith.mulf %3, %2 : vector<1x1xf32>
    %5 = arith.addf %0, %4 : vector<1x1xf32>
    %6 = arith.subf %5, %0 : vector<1x1xf32>
    %7 = arith.divf %6, %3 : vector<1x1xf32>
    %cst = arith.constant -5.000000e-01 : f32
    %8 = vector.broadcast %cst : f32 to vector<1x1xf32>
    %9 = arith.mulf %8, %7 : vector<1x1xf32>
    %10 = arith.mulf %9, %7 : vector<1x1xf32>
    %11 = arith.subf %10, %1 : vector<1x1xf32>
    %cst_5 = arith.constant 0.918938517 : f32
    %12 = vector.broadcast %cst_5 : f32 to vector<1x1xf32>
    %13 = arith.subf %11, %12 : vector<1x1xf32>
    %c0_6 = arith.constant 0 : index
    %c0_7 = arith.constant 0 : index
    %14 = vector.load %arg3[%c0_6, %c0_7] : memref<1x1xf32, #tpu.memory_space<vmem>>, vector<1x1xf32>
    tpu.vector_store %arg3[%c0_6, %c0_7], %3 {strides = array<i32>} : memref<1x1xf32, #tpu.memory_space<vmem>>, vector<1x1xf32>,
    %c0_8 = arith.constant 0 : index
    %c0_9 = arith.constant 0 : index
    %15 = vector.load %arg4[%c0_8, %c0_9] : memref<1x1xf32, #tpu.memory_space<vmem>>, vector<1x1xf32>
    tpu.vector_store %arg4[%c0_8, %c0_9], %5 {strides = array<i32>} : memref<1x1xf32, #tpu.memory_space<vmem>>, vector<1x1xf32>,
    %c0_10 = arith.constant 0 : index
    %c0_11 = arith.constant 0 : index
    %16 = vector.load %arg5[%c0_10, %c0_11] : memref<1x1xf32, #tpu.memory_space<vmem>>, vector<1x1xf32>
    tpu.vector_store %arg5[%c0_10, %c0_11], %13 {strides = array<i32>} : memref<1x1xf32, #tpu.memory_space<vmem>>, vector<1x1xf32>,
    return
  }
}

</mosaic_0001>

<bundles_post_ra>
// kernel: policy_g_forward.1
= control target key start
LH: loop header
LB: loop body
LE: loop exit
PB: predicated region body
PF: predicated region fallthrough
CT: control target
= control target key end

     0   :  { %s243_s0 = inlined_call_operand.<no memory space> [shape: f32[1,1], index: 0, kind: input, shape index: {}]   ;;  %s244_s3 = inlined_call_operand.hbm [shape: f32[1,1], index: 3, kind: output, shape index: {0}]   ;;  %s245_s4 = inlined_call_operand.hbm [shape: f32[1,1], index: 4, kind: output, shape index: {1}]   ;;  %s246_s5 = inlined_call_operand.hbm [shape: f32[1,1], index: 5, kind: output, shape index: {2}]   ;;  %s247_s1 = inlined_call_operand.<no memory space> [shape: f32[1,1], index: 1, kind: input, shape index: {}]   ;;  %s248_s2 = inlined_call_operand.<no memory space> [shape: f32[1,1], index: 2, kind: input, shape index: {}]  }
   0x1   :  { %v11_v0 = vstv %s243_s0  ;;  %v13_v1 = vstv %s247_s1  ;;  %v15_v2 = vstv %s248_s2 }
   0x2   :  { %12 = vst [vmem:[#allocation2] sm:$0x1] %v11_v0  ;;  %14 = vst [vmem:[#allocation3] sm:$0x1] %v13_v1 }
   0x3   :  { %16 = vst [vmem:[#allocation4] sm:$0x1] %v15_v2 }
   0x4   :  { %17 = vsyncpa [#allocation6], 0 }
   0x9   :  { %v26_v3 = vld [vmem:[#allocation3] sm:$0x1] }
   0xa   :  { %v28_v4 = vmul.f32 1.442695, %v26_v3 }
   0xb   :  { %18 = vsyncpa [#allocation8], 0  ;;  %s162_s24 = smov [#allocation5]   ;;  %v27_v5 = vld [vmem:[#allocation4] sm:$0x1]  ;;  %vm39_vm0 = vcmask 0  }
   0xc   :  { %88 = vpow2.f32 %v28_v4  ;;  %s49_s25 = sshll.u32 %s162_s24, 4  ;;  %v25_v7 = vld [vmem:[#allocation2] sm:$0x1]  ;;  %s163_s0 = smov [#allocation7]   ;;  %s50_s25 = int_to_ptr.vmem [resolvable:$true] %s49_s25 }
   0xd   :  { %s59_s1 = sshll.u32 %s163_s0, 4  ;;  %s92_s2 = scalar_lea.vmem %s50_s25, 16  ;;  %s60_s1 = int_to_ptr.vmem [resolvable:$true] %s59_s1 }
   0xe   :  { %p93_p0 = scmp.ne.s32.totalorder %s50_s25, %s92_s2  ;;  %s96_s26 = scalar_lea.vmem %s50_s25, 32 }
   0xf   :  { %p97_p1 = scmp.lt.s32.totalorder %s50_s25, %s50_s25  ;;  %p98_p2 = scmp.lt.s32.totalorder %s96_s26, %s92_s2 }
  0x11   :  { %p99_p3 = por %p98_p2, %p97_p1 }
  0x13   :  { %p100_p4 = pnand %p99_p3, %p93_p0 }
  0x16   :  { %v89_v6 = vpop.eup %88 }
  0x17   :  { %v30_v8 = vmul.f32 %v89_v6, %v27_v5  ;;  %90 = vrcp.f32 %v89_v6  ;;  %40 = vst.msk [vmem:[#allocation5] sm:$0x1] %vm39_vm0, %v89_v6 }
  0x18   :  { %103 = shalt.err (!%p100_p4)
}
  0x19   :  { %s104_s29 = scalar_lea.hbm %s244_s3, 16 }
  0x1a   :  { %p105_p5 = scmp.ne.s32.totalorder %s244_s3, %s104_s29  ;;  %p108_p6 = scmp.lt.u32.totalorder %s104_s29, %s244_s3 }
  0x1c   :  { %p110_p7 = pnand %p108_p6, %p105_p5 }
  0x1e   :  { %113 = shalt.err (!%p110_p7)
}
  0x1f   :  { %52 = dma.vmem_to_hbm [thread:$0]  %s50_s25, 16, %s244_s3, [#allocation6]   ;;  %v31_v9 = vadd.f32 %v30_v8, %v25_v7 }
  0x20   :  { %s114_s11 = scalar_lea.vmem %s60_s1, 16  ;;  %s118_s12 = scalar_lea.vmem %s60_s1, 32 }
  0x21   :  { %41 = vst.msk [vmem:[#allocation7] sm:$0x1] %vm39_vm0, %v31_v9  ;;  %p115_p8 = scmp.ne.s32.totalorder %s60_s1, %s114_s11  ;;  %p119_p9 = scmp.lt.s32.totalorder %s60_s1, %s60_s1 }
  0x22   :  { %p120_p10 = scmp.lt.s32.totalorder %s118_s12, %s114_s11 }
  0x24   :  { %p121_p11 = por %p120_p10, %p119_p9 }
  0x26   :  { %p122_p12 = pnand %p121_p11, %p115_p8 }
  0x28   :  { %125 = shalt.err (!%p122_p12)
}
  0x29   :  { %s126_s15 = scalar_lea.hbm %s245_s4, 16 }
  0x2a   :  { %p127_p13 = scmp.ne.s32.totalorder %s245_s4, %s126_s15  ;;  %p130_p0 = scmp.lt.u32.totalorder %s126_s15, %s245_s4 }
  0x2c   :  { %p132_p1 = pnand %p130_p0, %p127_p13 }
  0x2e   :  { %135 = shalt.err (!%p132_p1)
}
  0x2f   :  { %62 = dma.vmem_to_hbm [thread:$0]  %s60_s1, 16, %s245_s4, [#allocation8]   ;;  %v32_v10 = vsub.f32 %v31_v9, %v25_v7  ;;  %v91_v11 = vpop.eup %90 }
  0x30   :  { %s164_s21 = smov [#allocation9]  }
  0x31   :  { %v34_v12 = vmul.f32 %v91_v11, %v32_v10  ;;  %s69_s22 = sshll.u32 %s164_s21, 4  ;;  %s70_s22 = int_to_ptr.vmem [resolvable:$true] %s69_s22 }
  0x32   :  { %s136_s23 = scalar_lea.vmem %s70_s22, 16  ;;  %s140_s24 = scalar_lea.vmem %s70_s22, 32 }
  0x33   :  { %v35_v13 = vmul.f32 -0.5, %v34_v12  ;;  %p137_p2 = scmp.ne.s32.totalorder %s70_s22, %s136_s23  ;;  %p141_p3 = scmp.lt.s32.totalorder %s70_s22, %s70_s22 }
  0x34   :  { %p142_p4 = scmp.lt.s32.totalorder %s140_s24, %s136_s23 }
  0x35   :  { %v36_v14 = vmul.f32 %v35_v13, %v34_v12 }
  0x36   :  { %p143_p5 = por %p142_p4, %p141_p3 }
  0x37   :  { %v37_v15 = vsub.f32 %v36_v14, %v26_v3 }
  0x38   :  { %p144_p6 = pnand %p143_p5, %p137_p2 }
  0x39   :  { %v84_v16 = vadd.f32 -0.9189385, %v37_v15 }
  0x3b   :  { %42 = vst.msk [vmem:[#allocation9] sm:$0x1] %vm39_vm0, %v84_v16 }
  0x3c   :  { %147 = shalt.err (!%p144_p6)
}
  0x3d   :  { %s148_s0 = scalar_lea.hbm %s246_s5, 16 }
  0x3e   :  { %p149_p7 = scmp.ne.s32.totalorder %s246_s5, %s148_s0  ;;  %p152_p8 = scmp.lt.u32.totalorder %s148_s0, %s246_s5 }
  0x40   :  { %p154_p9 = pnand %p152_p8, %p149_p7 }
  0x42   :  { %157 = shalt.err (!%p154_p9)
}
  0x43   :  { %72 = dma.vmem_to_hbm [thread:$0]  %s70_s22, 16, %s246_s5, [#allocation8]  }
  0x44   :  { %158 = dma.done.wait [#allocation6], 16  }
  0x45   :  { %159 = vsyncadd [#allocation6], 4294967280 }
  0x46   :  { %160 = dma.done.wait [#allocation8], 32  }
  0x47   :  { %161 = vsyncadd [#allocation8], 4294967264 }
  0x48   :  { %82 = vsyncpa [#allocation6], 1 }
  0x49   :  { %83 = vsyncpa [#allocation8], 1 }

</bundles_post_ra>
